<compile_context>
chip_gen: v6e
topology: v6e:2x2x1
jax: 0.10.0
libtpu: 0.0.40
codegen_flags: <defaults>
</compile_context>

<pallas_src>
import jax
import jax.numpy as jnp
from jax import lax
from jax.experimental import pallas as pl
from jax.experimental.pallas import tpu as pltpu


# ---------------------------------------------------------------------------
# Pallas kernels
# ---------------------------------------------------------------------------

def _affine_kernel(x_ref, s_ref, t_ref, o_ref):
    """y = x * scale + shift.  scale/shift blocks are (R, L) or (R, 1)."""
    x = x_ref[...].astype(jnp.float32)
    o_ref[...] = (x * s_ref[...] + t_ref[...]).astype(o_ref.dtype)


def _rowstats_kernel(x_ref, sum_ref, sq_ref):
    """Accumulate per-row sum and sum-of-squares across lane (HW) tiles."""
    @pl.when(pl.program_id(1) == 0)
    def _():
        sum_ref[...] = jnp.zeros_like(sum_ref)
        sq_ref[...] = jnp.zeros_like(sq_ref)

    x = x_ref[...].astype(jnp.float32)
    sum_ref[...] += jnp.sum(x, axis=1, keepdims=True)
    sq_ref[...] += jnp.sum(x * x, axis=1, keepdims=True)


# ---------------------------------------------------------------------------
# pallas_call wrappers
# ---------------------------------------------------------------------------

def _affine_pallas(x2, scale, shift, R, L):
    NCp, HWp = x2.shape
    per_elem = scale.shape[1] != 1          # window path: (NCp, HWp) stats
    sL = L if per_elem else 1
    s_map = (lambda i, j: (i, j)) if per_elem else (lambda i, j: (i, 0))
    return pl.pallas_call(
        _affine_kernel,
        out_shape=jax.ShapeDtypeStruct(x2.shape, x2.dtype),
        grid_spec=pltpu.PrefetchScalarGridSpec(
            num_scalar_prefetch=0,
            grid=(NCp // R, HWp // L),
            in_specs=[
                pl.BlockSpec((R, L), lambda i, j: (i, j)),
                pl.BlockSpec((R, sL), s_map),
                pl.BlockSpec((R, sL), s_map),
            ],
            out_specs=pl.BlockSpec((R, L), lambda i, j: (i, j)),
        ),
        compiler_params=pltpu.CompilerParams(
            dimension_semantics=("parallel", "parallel")),
    )(x2, scale, shift)


def _rowstats_pallas(x2, R, L):
    NCp, HWp = x2.shape
    return pl.pallas_call(
        _rowstats_kernel,
        out_shape=(jax.ShapeDtypeStruct((NCp, 1), jnp.float32),
                   jax.ShapeDtypeStruct((NCp, 1), jnp.float32)),
        grid_spec=pltpu.PrefetchScalarGridSpec(
            num_scalar_prefetch=0,
            grid=(NCp // R, HWp // L),
            in_specs=[pl.BlockSpec((R, L), lambda i, j: (i, j))],
            out_specs=[pl.BlockSpec((R, 1), lambda i, j: (i, 0)),
                       pl.BlockSpec((R, 1), lambda i, j: (i, 0))],
        ),
        compiler_params=pltpu.CompilerParams(
            dimension_semantics=("parallel", "arbitrary")),
    )(x2)


# ---------------------------------------------------------------------------
# Tiling helpers
# ---------------------------------------------------------------------------

def _round_up(v, m):
    return -(-v // m) * m


def _pick_tile(total, candidates):
    for c in candidates:
        if total % c == 0:
            return c
    return candidates[-1]


def _sublane_quantum(dtype):
    return {4: 8, 2: 16, 1: 32}.get(jnp.dtype(dtype).itemsize, 8)


def _plan_2d(NC, HW, dtype):
    sub = _sublane_quantum(dtype)
    lane_align = 512 if HW >= 512 else 128
    NCp = _round_up(NC, sub)
    HWp = _round_up(HW, lane_align)
    R = _pick_tile(NCp, (4 * sub, 2 * sub, sub))
    L = _pick_tile(HWp, (2048, 1024, 512, 256, 128))
    return NCp, HWp, R, L


def _pad2d(a, rows, cols):
    r, c = a.shape
    if r == rows and c == cols:
        return a
    return jnp.pad(a, ((0, rows - r), (0, cols - c)))


# ---------------------------------------------------------------------------
# Module wrapper (mirrors LocalContextNorm.forward)
# ---------------------------------------------------------------------------

class LocalContextNormPallas:
    def __init__(self, num_features, channels_per_group=2,
                 window_size=(227, 227), eps=1e-5, weight=None, bias=None):
        # torch __init__: weight = ones(1, C, 1, 1), bias = zeros(1, C, 1, 1)
        self.weight = (jnp.ones((1, num_features, 1, 1), jnp.float32)
                       if weight is None else jnp.asarray(weight, jnp.float32))
        self.bias = (jnp.zeros((1, num_features, 1, 1), jnp.float32)
                     if bias is None else jnp.asarray(bias, jnp.float32))
        self.channels_per_group = channels_per_group
        self.window_size = window_size
        self.eps = eps
        self._fwd = jax.jit(self._forward)

    def __call__(self, x):
        return self._fwd(x, self.weight, self.bias)

    def _forward(self, x, weight, bias):
        N, C, H, W = x.shape
        cpg = self.channels_per_group
        assert C % cpg == 0
        G = C // cpg
        eps = self.eps
        NC, HW = N * C, H * W
        NCp, HWp, R, L = _plan_2d(NC, HW, x.dtype)

        x2 = _pad2d(x.reshape(NC, HW), NCp, HWp)

        wh, ww = self.window_size
        if wh < H and ww < W:
            # ---- local-window statistics via integral images (XLA glue) ----
            xf = x.astype(jnp.float32).reshape(N, G, cpg, H, W)
            s1 = xf.sum(axis=2)                 # reduce cpg BEFORE cumsum
            s2 = (xf * xf).sum(axis=2)
            ii = jnp.cumsum(jnp.cumsum(s1, axis=2), axis=3)
            ii2 = jnp.cumsum(jnp.cumsum(s2, axis=2), axis=3)

            def box(t):
                return (t[:, :, wh:, ww:] - t[:, :, :-wh, ww:]
                        - t[:, :, wh:, :-ww] + t[:, :, :-wh, :-ww])

            h, w_ = H - wh, W - ww
            n = wh * ww * cpg
            sums = box(ii)                      # (N, G, h, w_)
            sqs = box(ii2)
            means = sums / n
            var = jnp.maximum((sqs - sums * sums / n) / n, 0.0)  # clamp >= 0
            istd = lax.rsqrt(var + eps)

            pad_l = (W - w_) // 2
            pad_r = (W - w_) - pad_l
            pad_t = (H - h) // 2
            pad_b = (H - h) - pad_t
            pads = ((0, 0), (0, 0), (pad_t, pad_b), (pad_l, pad_r))
            pm = jnp.pad(means, pads, mode='edge')     # (N, G, H, W)
            pi = jnp.pad(istd, pads, mode='edge')

            # Fold weight/bias into per-channel scale/shift (no separate
            # weight/bias streams in the kernel).
            wc = weight.reshape(1, G, cpg, 1, 1)
            bc = bias.reshape(1, G, cpg, 1, 1)
            scale = pi[:, :, None, :, :] * wc          # (N, G, cpg, H, W)
            shift = bc - pm[:, :, None, :, :] * scale
            scale2 = _pad2d(scale.reshape(NC, HW), NCp, HWp)
            shift2 = _pad2d(shift.reshape(NC, HW), NCp, HWp)
            out2 = _affine_pallas(x2, scale2, shift2, R, L)
        else:
            # ---- global per-(N, group) normalization (two Pallas passes) ----
            sums, sqs = _rowstats_pallas(x2, R, L)        # (NCp, 1) f32 each
            s = sums[:NC, 0].reshape(N, G, cpg).sum(-1)   # (N, G)
            ss = sqs[:NC, 0].reshape(N, G, cpg).sum(-1)
            n_elem = cpg * HW
            denom = max(n_elem - 1, 1)                    # guard n_elem == 1
            mean = s / n_elem
            # torch.Tensor.var default is unbiased -> divide by (n - 1)
            var = jnp.maximum((ss - s * s / n_elem) / denom, 0.0)
            istd = lax.rsqrt(var + eps)                   # (N, G)

            wc = weight.reshape(G, cpg)
            bc = bias.reshape(G, cpg)
            scale_r = (istd[:, :, None] * wc[None]).reshape(NC)
            shift_r = (bc[None]
                       - mean[:, :, None] * istd[:, :, None] * wc[None]
                       ).reshape(NC)
            scale_r = jnp.pad(scale_r, (0, NCp - NC)).reshape(NCp, 1)
            shift_r = jnp.pad(shift_r, (0, NCp - NC)).reshape(NCp, 1)
            out2 = _affine_pallas(x2, scale_r, shift_r, R, L)

        return out2[:NC, :HW].reshape(N, C, H, W)


# ---------------------------------------------------------------------------
# Pure-JAX reference (mirrors torch forward semantics) for validation
# ---------------------------------------------------------------------------

def reference_lcn(x, weight, bias, cpg, window_size, eps):
    N, C, H, W = x.shape
    G = C // cpg
    wh, ww = window_size
    if wh < H and ww < W:
        ii = jnp.cumsum(jnp.cumsum(x, axis=2), axis=3)
        ii2 = jnp.cumsum(jnp.cumsum(x * x, axis=2), axis=3)

        def box(t):
            return (t[:, :, wh:, ww:] - t[:, :, :-wh, ww:]
                    - t[:, :, wh:, :-ww] + t[:, :, :-wh, :-ww])

        h, w_ = H - wh, W - ww
        sums = box(ii).reshape(N, G, cpg, h, w_).sum(axis=2)
        sqs = box(ii2).reshape(N, G, cpg, h, w_).sum(axis=2)
        n = wh * ww * cpg
        means = sums / n
        var = (sqs - sums * sums / n) / n
        pad_l = (W - w_) // 2
        pad_r = W - w_ - pad_l
        pad_t = (H - h) // 2
        pad_b = H - h - pad_t
        pads = ((0, 0), (0, 0), (pad_t, pad_b), (pad_l, pad_r))
        pm = jnp.repeat(jnp.pad(means, pads, mode='edge'), cpg, axis=1)
        pv = jnp.repeat(jnp.pad(var, pads, mode='edge') + eps, cpg, axis=1)
        xn = (x - pm) / jnp.sqrt(pv)
    else:
        xgr = x.reshape(N, G, -1)
        mean = xgr.mean(-1, keepdims=True)
        var = xgr.var(-1, keepdims=True, ddof=1)   # torch .var() is unbiased
        xn = ((xgr - mean) / jnp.sqrt(var + eps)).reshape(N, C, H, W)
    return xn * weight + bias


# ---------------------------------------------------------------------------

if __name__ == "__main__":
    key = jax.random.PRNGKey(0)
    k1, k2, k3 = jax.random.split(key, 3)

    N, C, H, W = 2, 4, 16, 16
    cpg = 2
    eps = 1e-5
    x = jax.random.normal(k1, (N, C, H, W), jnp.float32)
    # Deterministic synthetic params (torch defaults are ones/zeros; perturb
    # them so the affine path is exercised).
    weight = 1.0 + 0.1 * jax.random.normal(k2, (1, C, 1, 1), jnp.float32)
    bias = 0.1 * jax.random.normal(k3, (1, C, 1, 1), jnp.float32)

    # Path 1: default window (227, 227) >= spatial -> global group-norm path.
    mod = LocalContextNormPallas(C, channels_per_group=cpg,
                                 window_size=(227, 227), eps=eps,
                                 weight=weight, bias=bias)
    out = jax.block_until_ready(mod(x))
    ref = reference_lcn(x, weight, bias, cpg, (227, 227), eps)
    assert out.shape == (N, C, H, W) and out.dtype == x.dtype
    assert jnp.allclose(out, ref, rtol=1e-3, atol=1e-3), "groupnorm path mismatch"

    # Path 2: small window (4, 4) < spatial -> local integral-image path.
    mod2 = LocalContextNormPallas(C, channels_per_group=cpg,
                                  window_size=(4, 4), eps=eps,
                                  weight=weight, bias=bias)
    out2 = jax.block_until_ready(mod2(x))
    ref2 = reference_lcn(x, weight, bias, cpg, (4, 4), eps)
    assert jnp.allclose(out2, ref2, rtol=1e-3, atol=1e-3), "window path mismatch"

    print("KERNEL_OK")
</pallas_src>

<mosaic_0001>
module attributes {stable_mosaic.version = 11 : i64} {
  func.func @_rowstats_kernel(%arg0: i32, %arg1: i32, %arg2: memref<8x256xf32, #tpu.memory_space<vmem>>, %arg3: memref<8x1xf32, #tpu.memory_space<vmem>>, %arg4: memref<8x1xf32, #tpu.memory_space<vmem>>) attributes {dimension_semantics = [#tpu.dimension_semantics<parallel>, #tpu.dimension_semantics<arbitrary>], iteration_bounds = array<i64: 1, 1>, scalar_prefetch = 0 : i64, scratch_operands = 0 : i64, tpu.core_type = #tpu.core_type<tc>, window_params = [{transform_indices = @transform_0, window_bounds = array<i64: 8, 256>}, {transform_indices = @transform_1, window_bounds = array<i64: 8, 1>}, {transform_indices = @transform_2, window_bounds = array<i64: 8, 1>}]} {
    %c0_i32 = arith.constant 0 : i32
    %0 = arith.cmpi eq, %arg1, %c0_i32 : i32
    %1 = arith.extui %0 : i1 to i32
    %c0_i32_0 = arith.constant 0 : i32
    %2 = arith.cmpi ne, %1, %c0_i32_0 : i32
    scf.if %2 {
      %cst_11 = arith.constant 0.000000e+00 : f32
      %15 = vector.broadcast %cst_11 : f32 to vector<8x1xf32>
      %c0_12 = arith.constant 0 : index
      %c0_13 = arith.constant 0 : index
      %16 = vector.load %arg3[%c0_12, %c0_13] : memref<8x1xf32, #tpu.memory_space<vmem>>, vector<8x1xf32>
      tpu.vector_store %arg3[%c0_12, %c0_13], %15 {strides = array<i32>} : memref<8x1xf32, #tpu.memory_space<vmem>>, vector<8x1xf32>,
      %cst_14 = arith.constant 0.000000e+00 : f32
      %17 = vector.broadcast %cst_14 : f32 to vector<8x1xf32>
      %c0_15 = arith.constant 0 : index
      %c0_16 = arith.constant 0 : index
      %18 = vector.load %arg4[%c0_15, %c0_16] : memref<8x1xf32, #tpu.memory_space<vmem>>, vector<8x1xf32>
      tpu.vector_store %arg4[%c0_15, %c0_16], %17 {strides = array<i32>} : memref<8x1xf32, #tpu.memory_space<vmem>>, vector<8x1xf32>,
    } else {
    }
    %c0 = arith.constant 0 : index
    %c0_1 = arith.constant 0 : index
    %3 = vector.load %arg2[%c0, %c0_1] : memref<8x256xf32, #tpu.memory_space<vmem>>, vector<8x256xf32>
    %c0_2 = arith.constant 0 : index
    %c0_3 = arith.constant 0 : index
    %4 = vector.load %arg3[%c0_2, %c0_3] : memref<8x1xf32, #tpu.memory_space<vmem>>, vector<8x1xf32>
    %cst = arith.constant dense<0.000000e+00> : vector<8xf32>
    %5 = vector.multi_reduction <add>, %3, %cst [1] : vector<8x256xf32> to vector<8xf32>
    %6 = vector.shape_cast %5 : vector<8xf32> to vector<8x1xf32>
    %7 = arith.addf %4, %6 : vector<8x1xf32>
    %c0_4 = arith.constant 0 : index
    %c0_5 = arith.constant 0 : index
    %8 = vector.load %arg3[%c0_4, %c0_5] : memref<8x1xf32, #tpu.memory_space<vmem>>, vector<8x1xf32>
    tpu.vector_store %arg3[%c0_4, %c0_5], %7 {strides = array<i32>} : memref<8x1xf32, #tpu.memory_space<vmem>>, vector<8x1xf32>,
    %c0_6 = arith.constant 0 : index
    %c0_7 = arith.constant 0 : index
    %9 = vector.load %arg4[%c0_6, %c0_7] : memref<8x1xf32, #tpu.memory_space<vmem>>, vector<8x1xf32>
    %10 = arith.mulf %3, %3 : vector<8x256xf32>
    %cst_8 = arith.constant dense<0.000000e+00> : vector<8xf32>
    %11 = vector.multi_reduction <add>, %10, %cst_8 [1] : vector<8x256xf32> to vector<8xf32>
    %12 = vector.shape_cast %11 : vector<8xf32> to vector<8x1xf32>
    %13 = arith.addf %9, %12 : vector<8x1xf32>
    %c0_9 = arith.constant 0 : index
    %c0_10 = arith.constant 0 : index
    %14 = vector.load %arg4[%c0_9, %c0_10] : memref<8x1xf32, #tpu.memory_space<vmem>>, vector<8x1xf32>
    tpu.vector_store %arg4[%c0_9, %c0_10], %13 {strides = array<i32>} : memref<8x1xf32, #tpu.memory_space<vmem>>, vector<8x1xf32>,
    return
  }
  func.func @transform_0(%arg0: i32, %arg1: i32) -> (i32, i32) {
    %c0_i32 = arith.constant 0 : i32
    return %arg0, %arg1 : i32, i32
  }
  func.func @transform_1(%arg0: i32, %arg1: i32) -> (i32, i32) {
    %c0_i32 = arith.constant 0 : i32
    %c0_i32_0 = arith.constant 0 : i32
    return %arg0, %c0_i32 : i32, i32
  }
  func.func @transform_2(%arg0: i32, %arg1: i32) -> (i32, i32) {
    %c0_i32 = arith.constant 0 : i32
    %c0_i32_0 = arith.constant 0 : i32
    return %arg0, %c0_i32 : i32, i32
  }
}

module attributes {stable_mosaic.version = 11 : i64} {
  func.func @_affine_kernel(%arg0: i32, %arg1: i32, %arg2: memref<8x256xf32, #tpu.memory_space<vmem>>, %arg3: memref<8x1xf32, #tpu.memory_space<vmem>>, %arg4: memref<8x1xf32, #tpu.memory_space<vmem>>, %arg5: memref<8x256xf32, #tpu.memory_space<vmem>>) attributes {dimension_semantics = [#tpu.dimension_semantics<parallel>, #tpu.dimension_semantics<parallel>], iteration_bounds = array<i64: 1, 1>, scalar_prefetch = 0 : i64, scratch_operands = 0 : i64, tpu.core_type = #tpu.core_type<tc>, window_params = [{transform_indices = @transform_0, window_bounds = array<i64: 8, 256>}, {transform_indices = @transform_1, window_bounds = array<i64: 8, 1>}, {transform_indices = @transform_2, window_bounds = array<i64: 8, 1>}, {transform_indices = @transform_3, window_bounds = array<i64: 8, 256>}]} {
    %c0 = arith.constant 0 : index
    %c0_0 = arith.constant 0 : index
    %0 = vector.load %arg2[%c0, %c0_0] : memref<8x256xf32, #tpu.memory_space<vmem>>, vector<8x256xf32>
    %c0_1 = arith.constant 0 : index
    %c0_2 = arith.constant 0 : index
    %1 = vector.load %arg3[%c0_1, %c0_2] : memref<8x1xf32, #tpu.memory_space<vmem>>, vector<8x1xf32>
    %2 = vector.broadcast %1 : vector<8x1xf32> to vector<8x256xf32>
    %3 = arith.mulf %0, %2 : vector<8x256xf32>
    %c0_3 = arith.constant 0 : index
    %c0_4 = arith.constant 0 : index
    %4 = vector.load %arg4[%c0_3, %c0_4] : memref<8x1xf32, #tpu.memory_space<vmem>>, vector<8x1xf32>
    %5 = vector.broadcast %4 : vector<8x1xf32> to vector<8x256xf32>
    %6 = arith.addf %3, %5 : vector<8x256xf32>
    %c0_5 = arith.constant 0 : index
    %c0_6 = arith.constant 0 : index
    %7 = vector.load %arg5[%c0_5, %c0_6] : memref<8x256xf32, #tpu.memory_space<vmem>>, vector<8x256xf32>
    tpu.vector_store %arg5[%c0_5, %c0_6], %6 {strides = array<i32>} : memref<8x256xf32, #tpu.memory_space<vmem>>, vector<8x256xf32>,
    return
  }
  func.func @transform_0(%arg0: i32, %arg1: i32) -> (i32, i32) {
    %c0_i32 = arith.constant 0 : i32
    return %arg0, %arg1 : i32, i32
  }
  func.func @transform_1(%arg0: i32, %arg1: i32) -> (i32, i32) {
    %c0_i32 = arith.constant 0 : i32
    %c0_i32_0 = arith.constant 0 : i32
    return %arg0, %c0_i32 : i32, i32
  }
  func.func @transform_2(%arg0: i32, %arg1: i32) -> (i32, i32) {
    %c0_i32 = arith.constant 0 : i32
    %c0_i32_0 = arith.constant 0 : i32
    return %arg0, %c0_i32 : i32, i32
  }
  func.func @transform_3(%arg0: i32, %arg1: i32) -> (i32, i32) {
    %c0_i32 = arith.constant 0 : i32
    return %arg0, %arg1 : i32, i32
  }
}

</mosaic_0001>

<bundles_post_ra>
// kernel: sub.7
= control target key start
LH: loop header
LB: loop body
LE: loop exit
PB: predicated region body
PF: predicated region fallthrough
CT: control target
= control target key end

     0   :  { %vm8_vm0 = vcmask 15360   ;;  %s42_s0 = inlined_call_operand.vmem [shape: f32[4], index: 0, kind: input, shape index: {}]   ;;  %s43_s1 = inlined_call_operand.vmem [shape: f32[2,2], index: 1, kind: output, shape index: {}]  }
   0x1   :  { %v5_v0 = vld [vmem:[%s42_s0] sm:$0x1]  ;;  %s25_s0 = smov 126  }
   0x2   :  { %6 = vst [vmem:[#allocation1] sm:$0x1] %v5_v0 }
   0x9   :  { %v10_v1 = vld [vmem:[#allocation1] sm:$0x1]  }
   0xa   :  { %v7_v2 = vld [vmem:[#allocation1] sm:$0x1]   ;;  %11 = vrot.lane.b32.xlu0 %v10_v1, %s25_s0 }
   0xb   :  { %9 = vst.msk [vmem:[#allocation0] sm:$0x1] %vm8_vm0, %v7_v2  }
  0x7c   :  { %v12_v3 = vpop.permute.xlu0 %11  }
  0x7d   :  { %15 = vst.msk [vmem:[#allocation0 + $0x1] sm:$0x1] %vm8_vm0, %v12_v3  }
  0x84   :  { %v20_v4 = vld [vmem:[#allocation0] sm:$0x3] }
  0x85   :  { %23 = vst [vmem:[%s43_s1] sm:$0x3] %v20_v4 }

// kernel: squeeze.2
= control target key start
LH: loop header
LB: loop body
LE: loop exit
PB: predicated region body
PF: predicated region fallthrough
CT: control target
= control target key end

     0   :  { %vm8_vm0 = vcmask 15360   ;;  %s47_s8 = smov 122   ;;  %s48_s9 = smov 124   ;;  %s72_s0 = inlined_call_operand.vmem [shape: f32[8], index: 0, kind: input, shape index: {}]   ;;  %s73_s1 = inlined_call_operand.vmem [shape: f32[2,2,2], index: 1, kind: output, shape index: {}]  }
   0x1   :  { %v5_v0 = vld [vmem:[%s72_s0] sm:$0x1]  ;;  %s46_s0 = smov 126  }
   0x2   :  { %6 = vst [vmem:[#allocation1] sm:$0x1] %v5_v0 }
   0x9   :  { %v10_v1 = vld [vmem:[#allocation1] sm:$0x1]  }
   0xa   :  { %v22_v2 = vld [vmem:[#allocation1] sm:$0x1]   ;;  %11 = vrot.lane.b32.xlu0 %v10_v1, %s46_s0 }
   0xb   :  { %23 = vrot.lane.b32.xlu1 %v22_v2, %s47_s8  ;;  %v7_v3 = vld [vmem:[#allocation1] sm:$0x1]  }
   0xc   :  { %v16_v4 = vld [vmem:[#allocation1] sm:$0x1]   ;;  %9 = vst.msk [vmem:[#allocation0] sm:$0x1] %vm8_vm0, %v7_v3  }
   0xe   :  { %17 = vrot.lane.b32.xlu0 %v16_v4, %s48_s9 }
  0x7c   :  { %v12_v5 = vpop.permute.xlu0 %11  }
  0x7d   :  { %v24_v6 = vpop.permute.xlu1 %23   ;;  %15 = vst.msk [vmem:[#allocation0 + $0x1] sm:$0x1] %vm8_vm0, %v12_v5  }
  0x7e   :  { %27 = vst.msk [vmem:[#allocation0 + $0x9] sm:$0x1] %vm8_vm0, %v24_v6  }
  0x80   :  { %v18_v7 = vpop.permute.xlu0 %17  }
  0x81   :  { %21 = vst.msk [vmem:[#allocation0 + $0x8] sm:$0x1] %vm8_vm0, %v18_v7  }
  0x84   :  { %v32_v8 = vld [vmem:[#allocation0] sm:$0x3] }
  0x85   :  { %35 = vst [vmem:[%s73_s1] sm:$0x3] %v32_v8 }
  0x88   :  { %v37_v9 = vld [vmem:[#allocation0 + $0x8] sm:$0x3] }
  0x89   :  { %42 = vst [vmem:[%s73_s1 + $0x2] sm:$0x3] %v37_v9 }

// kernel: _forward.3
= control target key start
LH: loop header
LB: loop body
LE: loop exit
PB: predicated region body
PF: predicated region fallthrough
CT: control target
= control target key end

     0   :  { %v40_v0 = vmov 0   ;;  %s79_s1 = inlined_call_operand.vmem [shape: f32[8,1], index: 1, kind: input, shape index: {}]   ;;  %s80_s2 = inlined_call_operand.vmem [shape: f32[8,1], index: 2, kind: input, shape index: {}]   ;;  %s81_s0 = inlined_call_operand.vmem [shape: f32[8,256], index: 0, kind: input, shape index: {}]   ;;  %s82_s3 = inlined_call_operand.vmem [shape: f32[8,256], index: 3, kind: output, shape index: {}]  }
   0x1   :  { %39 = vset.pattern.permute.xlu0 %v40_v0  ;;  %v16_v1 = vld [vmem:[%s79_s1] sm:$0xff]  ;;  %v15_v5 = vld [vmem:[%s81_s0 + $0x8] sm:$0xff] }
   0x2   :  { %19 = vperm.xlu0 %39, %v16_v1   ;;  %v24_v2 = vld [vmem:[%s80_s2] sm:$0xff] }
   0x3   :  { %v14_v4 = vld [vmem:[%s81_s0] sm:$0xff] }
   0x6   :  { %27 = vperm.xlu0 %39, %v24_v2  }
  0x7d   :  { %v20_v3 = vpop.permute.xlu0 %19 }
  0x7e   :  { %v22_v6 = vmul.f32 %v20_v3, %v14_v4  ;;  %v23_v7 = vmul.f32 %v20_v3, %v15_v5 }
  0x81   :  { %v28_v8 = vpop.permute.xlu0 %27 }
  0x82   :  { %v30_v9 = vadd.f32 %v28_v8, %v22_v6  ;;  %v31_v10 = vadd.f32 %v28_v8, %v23_v7 }
  0x84   :  { %32 = vst [vmem:[%s82_s3] sm:$0xff] %v30_v9  ;;  %33 = vst [vmem:[%s82_s3 + $0x8] sm:$0xff] %v31_v10 }

// kernel: _forward.2
= control target key start
LH: loop header
LB: loop body
LE: loop exit
PB: predicated region body
PF: predicated region fallthrough
CT: control target
= control target key end

     0   :  { %vm14_vm0 = vcmask 7168   ;;  %v43_v2 = vmov 0.0   ;;  %s87_s0 = inlined_call_operand.vmem [shape: f32[8,256], index: 0, kind: input, shape index: {}]   ;;  %s88_s1 = inlined_call_operand.vmem [shape: f32[8,1], index: 1, kind: output, shape index: {0}]   ;;  %s89_s2 = inlined_call_operand.vmem [shape: f32[8,1], index: 2, kind: output, shape index: {1}]  }
   0x1   :  { %v17_v0 = vld [vmem:[%s87_s0] sm:$0xff]  ;;  %v18_v1 = vld [vmem:[%s87_s0 + $0x8] sm:$0xff]  ;;  %15 = vst.msk [vmem:[%s88_s1] sm:$0xff] %vm14_vm0, %v43_v2  ;;  %16 = vst.msk [vmem:[%s89_s2] sm:$0xff] %vm14_vm0, %v43_v2 }
   0x2   :  { %v20_v3 = vadd.f32 %v18_v1, %v17_v0  ;;  %v27_v4 = vmul.f32 %v17_v0, %v17_v0  ;;  %v28_v5 = vmul.f32 %v18_v1, %v18_v1 }
   0x4   :  { %21 = vadd.xlane.f32.xlu0 %v20_v3  ;;  %v29_v6 = vadd.f32 %v28_v5, %v27_v4 }
   0x8   :  { %30 = vadd.xlane.f32.xlu0 %v29_v6  ;;  %v19_v7 = vld [vmem:[%s88_s1] sm:$0xff] }
   0x9   :  { %v26_v10 = vld [vmem:[%s89_s2] sm:$0xff] }
  0x8d   :  { %v22_v8 = vpop.xlane.xlu0 %21 }
  0x8e   :  { %v23_v9 = vadd.f32 %v22_v8, %v19_v7 }
  0x90   :  { %25 = vst.msk [vmem:[%s88_s1] sm:$0xff] %vm14_vm0, %v23_v9 }
  0x91   :  { %v31_v11 = vpop.xlane.xlu0 %30 }
  0x92   :  { %v32_v12 = vadd.f32 %v31_v11, %v26_v10 }
  0x94   :  { %33 = vst.msk [vmem:[%s89_s2] sm:$0xff] %vm14_vm0, %v32_v12 }

</bundles_post_ra>
